<compile_context>
chip_gen: v6e
topology: v6e:2x2x1
jax: 0.10.0
libtpu: 0.0.40
codegen_flags: <defaults>
</compile_context>

<pallas_src>
import jax
import jax.numpy as jnp
from jax.experimental import pallas as pl
from jax.experimental.pallas import tpu as pltpu

_R = 8  # factorization rank padded to 8 (true rank is 4; extra columns are zero)


def _round_up(x, m):
    return ((x + m - 1) // m) * m


# ---------------------------------------------------------------------------
# Kernel A: per (batch b, spatial tile k):
#   S[b] += x[b, :, tile_k] @ U[tile_k]                (C, TK) @ (TK, R)
# finalize (last k):
#   P    = Wg @ S[b] + bg * colsum(U)                  g-conv pushed through U
#   Q[b] = We_bn @ P                                   extend conv + folded BN
# ---------------------------------------------------------------------------
def pos_project_kernel(x_ref, u_ref, wg_ref, bg_ref, we_ref, usum_ref,
                       q_ref, s_acc):
    k = pl.program_id(1)

    @pl.when(k == 0)
    def _():
        s_acc[...] = jnp.zeros_like(s_acc)

    # (C, TK) @ (TK, R) -> (C, R), f32 accumulate
    s_acc[...] += jnp.dot(x_ref[0], u_ref[...],
                          preferred_element_type=jnp.float32)

    @pl.when(k == pl.num_programs(1) - 1)
    def _():
        p = jnp.dot(wg_ref[...], s_acc[...],                # (Cr, C) @ (C, R)
                    preferred_element_type=jnp.float32)
        p = p + bg_ref[...] * usum_ref[...]                 # bias * colsum(U)
        q_ref[0] = jnp.dot(we_ref[...], p,                  # (C, Cr) @ (Cr, R)
                           preferred_element_type=jnp.float32)


# ---------------------------------------------------------------------------
# Kernel B: per (batch b, spatial tile j):
#   z   = Q[b] @ V^T[:, tile_j] + be_bn                (C, R) @ (R, TN)
#   out = relu(x[b, :, tile_j] + relu(z))
# ---------------------------------------------------------------------------
def nonlocal_apply_kernel(q_ref, vt_ref, be_ref, x_ref, o_ref):
    y = jnp.dot(q_ref[0], vt_ref[...], preferred_element_type=jnp.float32)
    z = jnp.maximum(y + be_ref[...], 0.0)                   # branch ReLU
    o_ref[0] = jnp.maximum(x_ref[0] + z, 0.0)               # residual + ReLU


# ---------------------------------------------------------------------------
# Exact rank-4 factorization of sim = scaler_norm(pos_dist^2):  sim = U @ V^T
# ---------------------------------------------------------------------------
def get_pos_sim_factors(H, W):
    xs = jnp.tile(jnp.arange(W, dtype=jnp.float32)[None, :], (H, 1)).reshape(-1)
    ys = jnp.tile(jnp.arange(H, dtype=jnp.float32)[:, None], (1, W)).reshape(-1)
    r = xs * xs + ys * ys
    # A.min() == 0 (diagonal); A.max() == (W-1)^2 + (H-1)^2 (corner-to-corner)
    denom = float((W - 1) ** 2 + (H - 1) ** 2) or 1.0   # guard degenerate 1x1
    U = jnp.stack([r / denom, jnp.ones_like(r), xs, ys], axis=1)            # (HW, 4)
    V = jnp.stack([jnp.ones_like(r), r / denom,
                   -2.0 * xs / denom, -2.0 * ys / denom], axis=1)           # (HW, 4)
    return U, V                                                             # sim = U @ V.T


# ---------------------------------------------------------------------------
# Wrapper
# ---------------------------------------------------------------------------
def multi_nonlocal_forward(x, w_g, b_g, w_e, b_e, bn_scale, bn_shift,
                           *, tile=1024):
    """x: (B, C, H, W) float32. Returns (B, C, H, W) float32."""
    B, C, H, W = x.shape
    HW = H * W
    Cr = w_g.shape[0]

    # ---- Fold eval-mode BatchNorm into the extend conv ---------------------
    w_e_f = (bn_scale[:, None] * w_e).astype(jnp.float32)                   # (C, Cr)
    b_e_f = (bn_scale * b_e + bn_shift).reshape(C, 1).astype(jnp.float32)   # (C, 1)

    # ---- Lane-dense spatial tiling ------------------------------------------
    TILE = min(_round_up(tile, 128), _round_up(HW, 128))
    HWp = _round_up(HW, TILE)
    NT = HWp // TILE

    # Invariant: padded spatial columns of x are zero, so they contribute
    # nothing to the x @ U reduction (the g-conv bias enters analytically via
    # colsum(U) over the valid positions only).
    x_flat = jnp.pad(x.reshape(B, C, HW).astype(jnp.float32),
                     ((0, 0), (0, 0), (0, HWp - HW)))

    U, V = get_pos_sim_factors(H, W)
    u_sum = jnp.pad(jnp.sum(U, axis=0, keepdims=True), ((0, 0), (0, _R - 4)))  # (1, R)
    U_p = jnp.pad(U, ((0, HWp - HW), (0, _R - 4)))                             # (HWp, R)
    Vt_p = jnp.pad(V, ((0, HWp - HW), (0, _R - 4))).T                          # (R, HWp)

    wg = w_g.astype(jnp.float32)                                               # (Cr, C)
    bg = b_g.reshape(Cr, 1).astype(jnp.float32)                                # (Cr, 1)

    # ---- Kernel A: Q[b] = We_bn @ (Wg @ (x[b] @ U) + bg * colsum(U)) --------
    flops_a = 2 * B * C * HWp * _R
    bytes_a = x_flat.size * 4 + U_p.size * 4 + B * C * _R * 4
    q = pl.pallas_call(
        pos_project_kernel,
        out_shape=jax.ShapeDtypeStruct((B, C, _R), jnp.float32),
        grid_spec=pltpu.PrefetchScalarGridSpec(
            num_scalar_prefetch=0,
            grid=(B, NT),
            in_specs=[
                pl.BlockSpec((1, C, TILE), lambda b, k: (b, 0, k)),   # x tile
                pl.BlockSpec((TILE, _R), lambda b, k: (k, 0)),        # U tile
                pl.BlockSpec((Cr, C), lambda b, k: (0, 0)),           # w_g
                pl.BlockSpec((Cr, 1), lambda b, k: (0, 0)),           # b_g
                pl.BlockSpec((C, Cr), lambda b, k: (0, 0)),           # w_e (BN folded)
                pl.BlockSpec((1, _R), lambda b, k: (0, 0)),           # colsum(U)
            ],
            out_specs=pl.BlockSpec((1, C, _R), lambda b, k: (b, 0, 0)),
            scratch_shapes=[pltpu.VMEM((C, _R), jnp.float32)],
        ),
        compiler_params=pltpu.CompilerParams(
            dimension_semantics=("parallel", "arbitrary"),
            vmem_limit_bytes=32 * 1024 * 1024),
        cost_estimate=pl.CostEstimate(
            flops=flops_a, transcendentals=0, bytes_accessed=bytes_a),
    )(x_flat, U_p, wg, bg, w_e_f, u_sum)

    # ---- Kernel B: out = relu(x + relu(Q @ V^T + be)) -----------------------
    flops_b = 2 * B * C * _R * HWp + 3 * B * C * HWp
    bytes_b = 2 * B * C * HWp * 4 + Vt_p.size * 4 + q.size * 4
    out_pad = pl.pallas_call(
        nonlocal_apply_kernel,
        out_shape=jax.ShapeDtypeStruct((B, C, HWp), jnp.float32),
        grid_spec=pltpu.PrefetchScalarGridSpec(
            num_scalar_prefetch=0,
            grid=(B, NT),
            in_specs=[
                pl.BlockSpec((1, C, _R), lambda b, j: (b, 0, 0)),     # Q
                pl.BlockSpec((_R, TILE), lambda b, j: (0, j)),        # V^T tile
                pl.BlockSpec((C, 1), lambda b, j: (0, 0)),            # b_e (BN folded)
                pl.BlockSpec((1, C, TILE), lambda b, j: (b, 0, j)),   # x residual tile
            ],
            out_specs=pl.BlockSpec((1, C, TILE), lambda b, j: (b, 0, j)),
        ),
        compiler_params=pltpu.CompilerParams(
            dimension_semantics=("parallel", "parallel"),
            vmem_limit_bytes=32 * 1024 * 1024),
        cost_estimate=pl.CostEstimate(
            flops=flops_b, transcendentals=0, bytes_accessed=bytes_b),
    )(q, Vt_p, b_e_f, x_flat)

    return out_pad[:, :, :HW].reshape(B, C, H, W)


# ---------------------------------------------------------------------------
# Dense positional-similarity matrix (for the correctness reference only)
# ---------------------------------------------------------------------------
def get_pos_sim(H, W):
    xs = jnp.tile(jnp.arange(W, dtype=jnp.float32)[None, :], (H, 1)).reshape(-1)
    ys = jnp.tile(jnp.arange(H, dtype=jnp.float32)[:, None], (1, W)).reshape(-1)
    x_dis = jnp.abs(xs[:, None] - xs[None, :])
    y_dis = jnp.abs(ys[:, None] - ys[None, :])
    A = x_dis ** 2 + y_dis ** 2
    A = (A - A.min()) / (A.max() - A.min())                 # scaler_norm
    return A                                                # (HW, HW), f32


# ---------------------------------------------------------------------------
# Pure-JAX f32 reference (dense sim path, for correctness check)
# ---------------------------------------------------------------------------
def reference(x, sim, w_g, b_g, w_e, b_e, bn_scale, bn_shift):
    B, C, H, W = x.shape
    xf = x.reshape(B, C, H * W)
    xg = jnp.einsum('rc,bcn->brn', w_g, xf) + b_g[None, :, None]
    y = jnp.einsum('brn,nm->brm', xg, sim)
    z = jnp.einsum('cr,brn->bcn', w_e, y) + b_e[None, :, None]
    z = z * bn_scale[None, :, None] + bn_shift[None, :, None]
    z = jnp.maximum(z, 0.0)
    out = jnp.maximum(xf + z, 0.0)
    return out.reshape(B, C, H, W)


if __name__ == "__main__":
    # Small shapes consistent with the module (NCHW input)
    B, C, H, W = 2, 4, 16, 16
    Cr = 2  # channel_reduced

    key = jax.random.PRNGKey(0)
    k_x, k_wg, k_bg, k_we, k_be = jax.random.split(key, 5)

    x = jax.random.normal(k_x, (B, C, H, W), dtype=jnp.float32)

    # 1x1 conv weights squeezed to 2D matrices
    w_g = jax.random.normal(k_wg, (Cr, C), dtype=jnp.float32) * 0.1
    b_g = jax.random.normal(k_bg, (Cr,), dtype=jnp.float32) * 0.1
    w_e = jax.random.normal(k_we, (C, Cr), dtype=jnp.float32) * 0.1
    b_e = jax.random.normal(k_be, (C,), dtype=jnp.float32) * 0.1

    # SyncBatchNorm (eval mode) defaults: gamma=1, beta=0, mean=0, var=1
    eps = 1e-5
    gamma = jnp.ones((C,), jnp.float32)
    beta = jnp.zeros((C,), jnp.float32)
    run_mean = jnp.zeros((C,), jnp.float32)
    run_var = jnp.ones((C,), jnp.float32)
    bn_scale = gamma / jnp.sqrt(run_var + eps)
    bn_shift = beta - run_mean * bn_scale

    # Sanity-check the exact rank-4 factorization against the dense sim.
    sim = get_pos_sim(H, W)
    U, V = get_pos_sim_factors(H, W)
    assert jnp.allclose(U @ V.T, sim, atol=1e-5), "sim factorization mismatch"

    # tile=128 => 2 spatial tiles at HW=256, exercising the tiled pipeline path.
    out = multi_nonlocal_forward(x, w_g, b_g, w_e, b_e, bn_scale, bn_shift,
                                 tile=128)
    out = jax.block_until_ready(out)

    ref = reference(x, sim, w_g, b_g, w_e, b_e, bn_scale, bn_shift)
    assert out.shape == (B, C, H, W)
    assert jnp.allclose(out, ref, atol=5e-2, rtol=2e-2), "mismatch vs reference"

    print("KERNEL_OK")
</pallas_src>

<mosaic_0001>
module attributes {stable_mosaic.version = 11 : i64} {
  func.func @pos_project_kernel(%arg0: i32, %arg1: i32, %arg2: memref<1x4x128xf32, #tpu.memory_space<vmem>>, %arg3: memref<128x8xf32, #tpu.memory_space<vmem>>, %arg4: memref<2x4xf32, #tpu.memory_space<vmem>>, %arg5: memref<2x1xf32, #tpu.memory_space<vmem>>, %arg6: memref<4x2xf32, #tpu.memory_space<vmem>>, %arg7: memref<1x8xf32, #tpu.memory_space<vmem>>, %arg8: memref<1x4x8xf32, #tpu.memory_space<vmem>>, %arg9: memref<4x8xf32, #tpu.memory_space<vmem>>) attributes {dimension_semantics = [#tpu.dimension_semantics<parallel>, #tpu.dimension_semantics<arbitrary>], iteration_bounds = array<i64: 2, 2>, scalar_prefetch = 0 : i64, scratch_operands = 1 : i64, tpu.core_type = #tpu.core_type<tc>, window_params = [{transform_indices = @transform_0, window_bounds = array<i64: 1, 4, 128>}, {transform_indices = @transform_1, window_bounds = array<i64: 128, 8>}, {pipeline_mode = #tpu.pipeline_mode<synchronous>, transform_indices = @transform_2, window_bounds = array<i64: 2, 4>}, {pipeline_mode = #tpu.pipeline_mode<synchronous>, transform_indices = @transform_3, window_bounds = array<i64: 2, 1>}, {pipeline_mode = #tpu.pipeline_mode<synchronous>, transform_indices = @transform_4, window_bounds = array<i64: 4, 2>}, {pipeline_mode = #tpu.pipeline_mode<synchronous>, transform_indices = @transform_5, window_bounds = array<i64: 1, 8>}, {transform_indices = @transform_6, window_bounds = array<i64: 1, 4, 8>}]} {
    %c0_i32 = arith.constant 0 : i32
    %0 = arith.cmpi eq, %arg1, %c0_i32 : i32
    %1 = arith.extui %0 : i1 to i32
    %c0_i32_0 = arith.constant 0 : i32
    %2 = arith.cmpi ne, %1, %c0_i32_0 : i32
    scf.if %2 {
      %cst_10 = arith.constant 0.000000e+00 : f32
      %13 = vector.broadcast %cst_10 : f32 to vector<4x8xf32>
      %c0_11 = arith.constant 0 : index
      %c0_12 = arith.constant 0 : index
      %14 = vector.load %arg9[%c0_11, %c0_12] : memref<4x8xf32, #tpu.memory_space<vmem>>, vector<4x8xf32>
      tpu.vector_store %arg9[%c0_11, %c0_12], %13 {strides = array<i32>} : memref<4x8xf32, #tpu.memory_space<vmem>>, vector<4x8xf32>,
    } else {
    }
    %c0 = arith.constant 0 : index
    %c0_1 = arith.constant 0 : index
    %3 = vector.load %arg9[%c0, %c0_1] : memref<4x8xf32, #tpu.memory_space<vmem>>, vector<4x8xf32>
    %c0_2 = arith.constant 0 : index
    %c0_3 = arith.constant 0 : index
    %c0_4 = arith.constant 0 : index
    %4 = vector.load %arg2[%c0_2, %c0_3, %c0_4] : memref<1x4x128xf32, #tpu.memory_space<vmem>>, vector<1x4x128xf32>
    %5 = vector.shape_cast %4 : vector<1x4x128xf32> to vector<4x128xf32>
    %c0_5 = arith.constant 0 : index
    %c0_6 = arith.constant 0 : index
    %6 = vector.load %arg3[%c0_5, %c0_6] : memref<128x8xf32, #tpu.memory_space<vmem>>, vector<128x8xf32>
    %cst = arith.constant dense<0.000000e+00> : vector<4x8xf32>
    %7 = tpu.matmul %5, %6, %cst {dimension_numbers = #tpu.dot_dimension_numbers<[1], [0], [0], [1], [0, 0, 1, 1], [], []>} : vector<4x128xf32>, vector<128x8xf32>, vector<4x8xf32> -> vector<4x8xf32>
    %8 = arith.addf %3, %7 : vector<4x8xf32>
    %c0_7 = arith.constant 0 : index
    %c0_8 = arith.constant 0 : index
    %9 = vector.load %arg9[%c0_7, %c0_8] : memref<4x8xf32, #tpu.memory_space<vmem>>, vector<4x8xf32>
    tpu.vector_store %arg9[%c0_7, %c0_8], %8 {strides = array<i32>} : memref<4x8xf32, #tpu.memory_space<vmem>>, vector<4x8xf32>,
    %c1_i32 = arith.constant 1 : i32
    %10 = arith.cmpi eq, %arg1, %c1_i32 : i32
    %11 = arith.extui %10 : i1 to i32
    %c0_i32_9 = arith.constant 0 : i32
    %12 = arith.cmpi ne, %11, %c0_i32_9 : i32
    scf.if %12 {
      %c0_10 = arith.constant 0 : index
      %c0_11 = arith.constant 0 : index
      %13 = vector.load %arg4[%c0_10, %c0_11] : memref<2x4xf32, #tpu.memory_space<vmem>>, vector<2x4xf32>
      %c0_12 = arith.constant 0 : index
      %c0_13 = arith.constant 0 : index
      %14 = vector.load %arg9[%c0_12, %c0_13] : memref<4x8xf32, #tpu.memory_space<vmem>>, vector<4x8xf32>
      %cst_14 = arith.constant dense<0.000000e+00> : vector<2x8xf32>
      %15 = tpu.matmul %13, %14, %cst_14 {dimension_numbers = #tpu.dot_dimension_numbers<[1], [0], [0], [1], [0, 0, 1, 1], [], []>} : vector<2x4xf32>, vector<4x8xf32>, vector<2x8xf32> -> vector<2x8xf32>
      %c0_15 = arith.constant 0 : index
      %c0_16 = arith.constant 0 : index
      %16 = vector.load %arg5[%c0_15, %c0_16] : memref<2x1xf32, #tpu.memory_space<vmem>>, vector<2x1xf32>
      %c0_17 = arith.constant 0 : index
      %c0_18 = arith.constant 0 : index
      %17 = vector.load %arg7[%c0_17, %c0_18] : memref<1x8xf32, #tpu.memory_space<vmem>>, vector<1x8xf32>
      %18 = vector.broadcast %16 : vector<2x1xf32> to vector<2x8xf32>
      %19 = vector.broadcast %17 : vector<1x8xf32> to vector<2x8xf32>
      %20 = arith.mulf %18, %19 : vector<2x8xf32>
      %21 = arith.addf %15, %20 : vector<2x8xf32>
      %c0_19 = arith.constant 0 : index
      %c0_20 = arith.constant 0 : index
      %22 = vector.load %arg6[%c0_19, %c0_20] : memref<4x2xf32, #tpu.memory_space<vmem>>, vector<4x2xf32>
      %cst_21 = arith.constant dense<0.000000e+00> : vector<4x8xf32>
      %23 = tpu.matmul %22, %21, %cst_21 {dimension_numbers = #tpu.dot_dimension_numbers<[1], [0], [0], [1], [0, 0, 1, 1], [], []>} : vector<4x2xf32>, vector<2x8xf32>, vector<4x8xf32> -> vector<4x8xf32>
      %c0_22 = arith.constant 0 : index
      %c0_23 = arith.constant 0 : index
      %c0_24 = arith.constant 0 : index
      %24 = vector.load %arg8[%c0_22, %c0_23, %c0_24] : memref<1x4x8xf32, #tpu.memory_space<vmem>>, vector<1x4x8xf32>
      %25 = vector.shape_cast %24 : vector<1x4x8xf32> to vector<4x8xf32>
      %26 = vector.shape_cast %23 : vector<4x8xf32> to vector<1x4x8xf32>
      tpu.vector_store %arg8[%c0_22, %c0_23, %c0_24], %26 {strides = array<i32>} : memref<1x4x8xf32, #tpu.memory_space<vmem>>, vector<1x4x8xf32>,
    } else {
    }
    return
  }
  func.func @transform_0(%arg0: i32, %arg1: i32) -> (i32, i32, i32) {
    %c0_i32 = arith.constant 0 : i32
    %c0_i32_0 = arith.constant 0 : i32
    return %arg0, %c0_i32, %arg1 : i32, i32, i32
  }
  func.func @transform_1(%arg0: i32, %arg1: i32) -> (i32, i32) {
    %c0_i32 = arith.constant 0 : i32
    %c0_i32_0 = arith.constant 0 : i32
    return %arg1, %c0_i32 : i32, i32
  }
  func.func @transform_2(%arg0: i32, %arg1: i32) -> (i32, i32) {
    %c0_i32 = arith.constant 0 : i32
    %c0_i32_0 = arith.constant 0 : i32
    %c0_i32_1 = arith.constant 0 : i32
    return %c0_i32, %c0_i32_0 : i32, i32
  }
  func.func @transform_3(%arg0: i32, %arg1: i32) -> (i32, i32) {
    %c0_i32 = arith.constant 0 : i32
    %c0_i32_0 = arith.constant 0 : i32
    %c0_i32_1 = arith.constant 0 : i32
    return %c0_i32, %c0_i32_0 : i32, i32
  }
  func.func @transform_4(%arg0: i32, %arg1: i32) -> (i32, i32) {
    %c0_i32 = arith.constant 0 : i32
    %c0_i32_0 = arith.constant 0 : i32
    %c0_i32_1 = arith.constant 0 : i32
    return %c0_i32, %c0_i32_0 : i32, i32
  }
  func.func @transform_5(%arg0: i32, %arg1: i32) -> (i32, i32) {
    %c0_i32 = arith.constant 0 : i32
    %c0_i32_0 = arith.constant 0 : i32
    %c0_i32_1 = arith.constant 0 : i32
    return %c0_i32, %c0_i32_0 : i32, i32
  }
  func.func @transform_6(%arg0: i32, %arg1: i32) -> (i32, i32, i32) {
    %c0_i32 = arith.constant 0 : i32
    %c0_i32_0 = arith.constant 0 : i32
    %c0_i32_1 = arith.constant 0 : i32
    return %arg0, %c0_i32, %c0_i32_0 : i32, i32, i32
  }
}

</mosaic_0001>

<bundles_post_ra>
// kernel: tpu_custom_call.1
= control target key start
LH: loop header
LB: loop body
LE: loop exit
PB: predicated region body
PF: predicated region fallthrough
CT: control target
= control target key end

     0   :  { %11 = vsyncpa [#allocation4], 0  ;;  %s1146_s0 = inlined_call_operand.vmem [shape: f32[2,4,256], index: 0, kind: input, shape index: {}]   ;;  %s1147_s1 = inlined_call_operand.vmem [shape: f32[256,8], index: 1, kind: input, shape index: {}]   ;;  %s1148_s2 = inlined_call_operand.vmem [shape: f32[2,4], index: 2, kind: input, shape index: {}]   ;;  %s1149_s3 = inlined_call_operand.vmem [shape: f32[2,1], index: 3, kind: input, shape index: {}]   ;;  %s1150_s4 = inlined_call_operand.vmem [shape: f32[4,2], index: 4, kind: input, shape index: {}]   ;;  %s1151_s5 = inlined_call_operand.vmem [shape: f32[1,8], index: 5, kind: input, shape index: {}]   ;;  %s1152_s6 = inlined_call_operand.hbm [shape: f32[2,4,8], index: 6, kind: output, shape index: {}]  }
   0x1   :  { %13 = vsyncpa [#allocation4 + $0x1], 0  ;;  %s973_s21 = smov 0   ;;  %s975_s22 = smov 0  }
   0x2   :  { %s977_s23 = smov 0   ;;  %s979_s24 = smov 0  }
   0x3   :  { %s981_s25 = smov 0   ;;  %s983_s26 = smov 0  }
   0x4   :  { %s985_s27 = smov 0   ;;  %s987_s28 = smov 0  }
   0x5 LB: > { %1157 = sst [smem:[#allocation6_spill]] %s921_s26  ;;  %s672_s29 = sadd.s32 4294967295, %s929_s28   ;;  %s929_s28 = sphi %s987_s28, %s19_s28   ;;  %s925_s27 = sphi %s985_s27, %s1167_s27   ;;  %s921_s26 = sphi %s983_s26, %s1166_s26   ;;  %s917_s25 = sphi %s981_s25, %s1165_s25   ;;  %s913_s24 = sphi %s979_s24, %s1164_s24   ;;  %s909_s23 = sphi %s977_s23, %s1170_s23   ;;  %s905_s22 = sphi %s975_s22, %s1169_s22   ;;  %s901_s21 = sphi %s973_s21, %s1168_s21  }
   0x6   : > { %1158 = sst [smem:[#allocation7_spill]] %s925_s27  ;;  %s673_s30 = sadd.s32 4294967294, %s929_s28  }
   0x7   : > { %s28_s7 = sadd.s32 1, %s921_s26  ;;  %s31_s8 = sadd.s32 1, %s925_s27 }
   0x8   : > { %p29_p0 = scmp.ge.s32.totalorder %s28_s7, 2  ;;  %p186_p1 = scmp.ne.s32.totalorder %s909_s23, %s905_s22 }
   0x9   : > { %p187_p2 = scmp.eq.s32.totalorder %s672_s29, 3  ;;  %p192_p4 = scmp.ne.s32.totalorder %s905_s22, %s901_s21 }
   0xa   : > { %s1172_s7 = smov (%p29_p0, %s28_s7), 0  ;;  %s1174_s8 = smov (!%p29_p0, %s31_s8), %s925_s27 }
   0xb   : > { %1159 = sst [smem:[#allocation8_spill]] %s1172_s7  ;;  %p1022_p3 = por %p187_p2, %p186_p1 }
   0xc   : > { %p33_p5 = scmp.ge.s32.totalorder %s1174_s8, 2  ;;  %p193_p6 = scmp.eq.s32.totalorder %s673_s30, 3 }
   0xd   : > { %p676_p7 = scmp.ge.s32.totalorder %s929_s28, 1  ;;  %p243_p8 = scmp.lt.s32.totalorder %s929_s28, 5 }
   0xe   : > { %s1176_s8 = smov (%p33_p5, %s1174_s8), 0  ;;  %p1032_p9 = por %p193_p6, %p192_p4 }
   0xf   : > { %1161 = sst [smem:[#allocation9_spill]] %s1176_s8  ;;  %p244_p10 = pnand %p676_p7, %p243_p8 }
  0x10   : > { %s173_s11 = ssub.s32 %s925_s27, %s1176_s8  ;;  %s176_s12 = sadd.s32 1, %s909_s23 }
  0x11   : > { %p174_p11 = scmp.eq.s32.totalorder %s173_s11, 0  ;;  %247 = sbr.rel (%p244_p10) target bundleno = 687 (0x2af), region = 44 }
  0x12   : > { %s1155_s14 = sand.u32 (!%p244_p10), 1, %s905_s22   ;;  %p281_p12 = scmp.lt.s32.totalorder (!%p244_p10), %s917_s25, 1 }
  0x13   : > { %s1040_s13 = scalar_select %p174_p11, %s909_s23, %s176_s12  }
  0x14   : > { %s1046_s15 = sshll.u32 (!%p244_p10), %s1155_s14, 2  ;;  %p283_p13 = scmp.lt.s32.totalorder (!%p244_p10), %s913_s24, 1 }
  0x15   : > { %s680_s16 = sshll.u32 (!%p244_p10), %s913_s24, 4  ;;  %s280_s26 = scalar_lea.vmem (!%p244_p10), [#allocation3], %s1046_s15 }
  0x16   : > { %s282_s17 = scalar_select %p281_p12, %s917_s25, 1 }
  0x17   : > { %s284_s18 = scalar_select %p283_p13, %s913_s24, 1 }
  0x18   : > { %s678_s19 = sshll.u32 %s282_s17, 1  ;;  %p290_p0 = scmp.lt.s32.totalorder %s680_s16, 31 }
  0x19   : > { %s286_s20 = sadd.s32 %s678_s19, %s284_s18  ;;  %p682_p1 = scmp.ne.s32.totalorder %s913_s24, 0 }
  0x1a   : > { %s679_s29 = sshll.u32 %s286_s20, 2  ;;  %s1178_s16 = smov (!%p290_p0, %s680_s16), 31 }
  0x1b   : > { %s1055_s12 = scalar_lea.vmem %s1146_s0, %s679_s29  ;;  %s681_s8 = sshll.u32 %s1178_s16, 3 }
  0x1c   : > { %s1060_s14 = scalar_lea.vmem %s1147_s1, %s681_s8  ;;  %298 = sbr.rel (%p682_p1) target bundleno = 35 (0x23), region = 48 }
  0x21   : > { %vm299_vm0 = vcmask 60416   ;;  %v931_v0 = vmov 0.0  }
  0x22   : > { %300 = vst.msk [vmem:[#allocation2] sm:$0xf] %vm299_vm0, %v931_v0 }
  0x23 PF: > { %v318_v1 = vld [vmem:[%s1060_s14 + $0x78] sm:$0xff]  ;;  %v932_v2 = vmov 0.0   ;;  %v317_v3 = vld [vmem:[%s1060_s14 + $0x70] sm:$0xff]  ;;  %vm933_vm1 = vmmov 0   ;;  %v316_v4 = vld [vmem:[%s1060_s14 + $0x68] sm:$0xff]  ;;  %vm390_vm2 = vcmask 60416  }
  0x24   : > { %714 = vmatprep.subr.mxu0 %v932_v2  ;;  %746 = vmatprep.mubr.msk.f32.mxu0 %vm933_vm1, %v932_v2  ;;  %v315_v5 = vld [vmem:[%s1060_s14 + $0x60] sm:$0xff]  ;;  %v314_v6 = vld [vmem:[%s1060_s14 + $0x58] sm:$0xff]  ;;  %v313_v7 = vld [vmem:[%s1060_s14 + $0x50] sm:$0xff]  ;;  %p683_p2 = scmp.ne.s32.totalorder %s913_s24, 1 }
  0x25   : > { %715 = vmatpush3.msra.mxu0 %v318_v1  ;;  %v312_v8 = vld [vmem:[%s1060_s14 + $0x48] sm:$0xff]  ;;  %v311_v9 = vld [vmem:[%s1060_s14 + $0x40] sm:$0xff]  ;;  %v310_v10 = vld [vmem:[%s1060_s14 + $0x38] sm:$0xff] }
  0x26   : > { %716 = vmatprep.subr.mxu0 %v932_v2  ;;  %v309_v11 = vld [vmem:[%s1060_s14 + $0x30] sm:$0xff]  ;;  %v308_v12 = vld [vmem:[%s1060_s14 + $0x28] sm:$0xff]  ;;  %v307_v13 = vld [vmem:[%s1060_s14 + $0x20] sm:$0xff] }
  0x27   : > { %717 = vmatpush3.msra.mxu0 %v317_v3  ;;  %v306_v14 = vld [vmem:[%s1060_s14 + $0x18] sm:$0xff]  ;;  %v305_v15 = vld [vmem:[%s1060_s14 + $0x10] sm:$0xff]  ;;  %v304_v16 = vld [vmem:[%s1060_s14 + $0x8] sm:$0xff] }
  0x28   : > { %718 = vmatprep.subr.mxu0 %v932_v2  ;;  %v303_v17 = vld [vmem:[%s1060_s14] sm:$0xff] }
  0x29   : > { %719 = vmatpush3.msra.mxu0 %v316_v4  ;;  %v302_v18 = vld [vmem:[%s1055_s12] sm:$0xf] }
  0x2a   : > { %720 = vmatprep.subr.mxu0 %v932_v2  ;;  %v301_v19 = vld [vmem:[#allocation2] sm:$0xf] }
  0x2b   : > { %721 = vmatpush3.msra.mxu0 %v315_v5 }
  0x2c   : > { %722 = vmatprep.subr.mxu0 %v932_v2 }
  0x2d   : > { %723 = vmatpush3.msra.mxu0 %v314_v6 }
  0x2e   : > { %724 = vmatprep.subr.mxu0 %v932_v2 }
  0x2f   : > { %725 = vmatpush3.msra.mxu0 %v313_v7 }
  0x30   : > { %726 = vmatprep.subr.mxu0 %v932_v2 }
  0x31   : > { %727 = vmatpush3.msra.mxu0 %v312_v8 }
  0x32   : > { %728 = vmatprep.subr.mxu0 %v932_v2 }
  0x33   : > { %729 = vmatpush3.msra.mxu0 %v311_v9 }
  0x34   : > { %730 = vmatprep.subr.mxu0 %v932_v2 }
  0x35   : > { %731 = vmatpush3.msra.mxu0 %v310_v10 }
  0x36   : > { %732 = vmatprep.subr.mxu0 %v932_v2 }
  0x37   : > { %733 = vmatpush3.msra.mxu0 %v309_v11 }
  0x38   : > { %734 = vmatprep.subr.mxu0 %v932_v2 }
  0x39   : > { %735 = vmatpush3.msra.mxu0 %v308_v12 }
  0x3a   : > { %736 = vmatprep.subr.mxu0 %v932_v2 }
  0x3b   : > { %737 = vmatpush3.msra.mxu0 %v307_v13 }
  0x3c   : > { %738 = vmatprep.subr.mxu0 %v932_v2 }
  0x3d   : > { %739 = vmatpush3.msra.mxu0 %v306_v14 }
  0x3e   : > { %740 = vmatprep.subr.mxu0 %v932_v2 }
  0x3f   : > { %741 = vmatpush3.msra.mxu0 %v305_v15 }
  0x40   : > { %742 = vmatprep.subr.mxu0 %v932_v2 }
  0x41   : > { %743 = vmatpush3.msra.mxu0 %v304_v16 }
  0x42   : > { %744 = vmatprep.subr.mxu0 %v932_v2 }
  0x43   : > { %745 = vmatpush3.msra.mxu0 %v303_v17 }
  0x44   : > { %747 = vmatmul.mubr.f32.vlgmr.msra.gmra.mxu0 %v302_v18 }
 0x103   : > { %395 = sbr.rel (%p683_p2) target bundleno = 663 (0x297), region = 52 }
 0x104   : > { %v385_v20 = vpop.f32.mrf.mxu0 }
 0x105   : > { %v389_v21 = vadd.f32 %v385_v20, %v301_v19 }
 0x106   : > { %v748_v22 = vpop.f32.mrf.mxu0 }
 0x107   : > { %391 = vst.msk [vmem:[#allocation2] sm:$0xf] %vm390_vm2, %v389_v21 }
 0x108   : > { %vm416_vm3 = vcmask 1043456   ;;  %vm412_vm4 = vcmask 31744   ;;  %v934_v24 = vmov 0.0   ;;  %vm935_vm5 = vmmov 0   ;;  %v396_v25 = vld [vmem:[%s1148_s2] sm:$0x3] }
 0x109   : > { %749 = vmatprep.subr.mxu0 %v934_v24  ;;  %751 = vmatprep.mubr.msk.f32.mxu0 %vm935_vm5, %v934_v24  ;;  %v398_v26 = vld [vmem:[%s1149_s3] sm:$0x3]  ;;  %v936_v27 = vmov 0   ;;  %vm495_vm6 = vcmask 1041408   ;;  %vm491_vm7 = vcmask 15360  }
 0x10a   : > { %836 = vset.pattern.permute.xlu0 %v936_v27  ;;  %754 = vmatprep.subr.mxu1 %v934_v24  ;;  %v684_v28 = vld [vmem:[%s1151_s5] ss:$0 sm:$0xff] }
 0x10b   : > { %402 = vperm.xlu0 %836, %v398_v26   ;;  %756 = vmatprep.mubr.msk.f32.mxu1 %vm935_vm5, %v934_v24  ;;  %v490_v33 = vld [vmem:[%s1150_s4] sm:$0xf] }
 0x10e   : > { %v397_v23 = vld [vmem:[#allocation2] sm:$0xf] }
 0x10f   : > { %750 = vmatpush3.msk.msra.mxu0 %vm416_vm3, %v397_v23 }
 0x110   : > { %752 = vmatmul.mubr.msk.f32.vlgmr.msra.gmra.mxu0 %vm412_vm4, %v396_v25 }
 0x186   : > { %v403_v29 = vpop.permute.xlu0 %402 }
 0x187   : > { %v411_v30 = vmul.f32 %v684_v28, %v403_v29 }
 0x1d0   : > { %v486_v31 = vpop.f32.mrf.mxu0 }
 0x1d1   : > { %v487_v32 = vadd.f32 %v486_v31, %v411_v30 }
 0x1d2   : > { %v753_v34 = vpop.f32.mrf.mxu0 }
 0x1d3   : > { %755 = vmatpush3.msk.msra.mxu1 %vm495_vm6, %v487_v32 }
 0x1d4   : > { %757 = vmatmul.mubr.msk.f32.vlgmr.msra.gmra.mxu1 %vm491_vm7, %v490_v33 }
 0x294   : > { %v565_v35 = vpop.f32.mrf.mxu1 }
 0x295   : > { %569 = vst.msk [vmem:[%s280_s26] sm:$0xf] %vm390_vm2, %v565_v35 }
 0x296   : > { %v758_v36 = vpop.f32.mrf.mxu1 }
 0x297 PF: > { %s690_s19 = sshll.u32 %s917_s25, 6  ;;  %s584_s11 = sshll.u32 %s280_s26, 4  ;;  %s585_s11 = int_to_ptr.vmem [resolvable:$true] %s584_s11 }
 0x298   : > { %s582_s30 = scalar_lea.hbm %s1152_s6, %s690_s19  ;;  %s1163_s12 = sand.u32 1, %s905_s22  }
 0x299   : > { %s571_s27 = scalar_lea.sflag [#allocation4], %s1163_s12  ;;  %s837_s7 = scalar_lea.vmem %s585_s11, 64 }
 0x29a   : > { %p838_p4 = scmp.ne.s32.totalorder %s585_s11, %s837_s7  ;;  %s937_s8 = smov [#allocation3]  }
 0x29b   : > { %s841_s14 = sshll.u32 %s937_s8, 4  ;;  %s842_s14 = int_to_ptr.vmem [resolvable:$false] %s841_s14 }
 0x29c   : > { %p839_p5 = pnand %p838_p4, %p1022_p3  ;;  %s843_s24 = scalar_lea.vmem %s842_s14, 128 }
 0x29d   : > { %p844_p7 = scmp.lt.s32.totalorder %s585_s11, %s842_s14  ;;  %p845_p8 = scmp.lt.s32.totalorder %s843_s24, %s837_s7 }
 0x29e   : > { %p840_p6 = pneg %p839_p5 }
 0x29f   : > { %p846_p10 = por %p845_p8, %p844_p7 }
 0x2a1   : > { %p847_p11 = pnand %p846_p10, %p840_p6 }
 0x2a3   : > { %850 = shalt.err (!%p847_p11)
}
 0x2a4   : > { %s851_s25 = scalar_lea.hbm %s582_s30, 64  ;;  %s855_s16 = scalar_lea.hbm %s1152_s6, 128 }
 0x2a5   : > { %p852_p12 = scmp.ne.s32.totalorder %s582_s30, %s851_s25  ;;  %p856_p1 = scmp.lt.s32.totalorder %s582_s30, %s1152_s6 }
 0x2a6   : > { %p857_p2 = scmp.lt.s32.totalorder %s855_s16, %s851_s25 }
 0x2a7   : > { %p853_p13 = pnand %p852_p12, %p1022_p3 }
 0x2a8   : > { %p858_p4 = por %p857_p2, %p856_p1 }
 0x2a9   : > { %p854_p0 = pneg %p853_p13 }
 0x2ab   : > { %p859_p5 = pnand %p858_p4, %p854_p0 }
 0x2ad   : > { %862 = shalt.err (!%p859_p5)
}
 0x2ae   : > { %759 = dma.vmem_to_hbm [thread:$0]  (%p1022_p3), %s585_s11, 64, %s582_s30, %s571_s27  }
 0x2af PF: > { %p765_p6 = scmp.ge.s32.totalorder %s929_s28, 2  ;;  %s596_s19 = sand.u32 1, %s901_s21  }
 0x2b0   : > { %s597_s20 = scalar_lea.sflag [#allocation4], %s596_s19 }
 0x2b1   : > { %p762_p7 = pnand %p765_p6, %p1032_p9 }
 0x2b3   : > { %p763_p8 = pneg %p762_p7 }
 0x2b5   : > { %896 = dma.done.wait (%p763_p8), %s597_s20, 64  }
 0x2b6   : > { %898 = vsyncadd (%p763_p8), %s597_s20, 4294967232  ;;  %s19_s28 = sadd.s32 1, %s929_s28   ;;  %s1164_s24 = sld [smem:[#allocation6_spill]] }
 0x2b7   : > { %p16_p10 = scmp.ge.s32.totalorder %s19_s28, 6   ;;  %s1165_s25 = sld [smem:[#allocation7_spill]] }
 0x2b8   : > { %s1166_s26 = sld [smem:[#allocation8_spill]]  ;;  %s1168_s21 = smov %s905_s22 }
 0x2b9   : > { %s1167_s27 = sld [smem:[#allocation9_spill]]  ;;  %s1169_s22 = smov %s909_s23 }
 0x2ba   : > { %s1170_s23 = smov %s1040_s13  ;;  %18 = sbr.rel (!%p16_p10) target bundleno = 5 (0x5), region = 90 }
 0x2bf   :  { %602 = vsyncpa [#allocation4], 1 }
 0x2c0   :  { %604 = vsyncpa [#allocation4 + $0x1], 1 }

</bundles_post_ra>
